<compile_context>
chip_gen: v6e
topology: v6e:2x2x1
jax: 0.10.0
libtpu: 0.0.40
codegen_flags: <defaults>
</compile_context>

<pallas_src>
import functools

import jax
import jax.numpy as jnp
from jax import lax
from jax.experimental import pallas as pl
from jax.experimental.pallas import tpu as pltpu

IGNORE_LABEL = 255   # config.ignore_label (standard segmentation ignore id)
NUM_CLASSES = 13     # implied by the class-weight vector length in __init__


def _ce_kernel(logits_ref, labels_ref, out_ref, *, num_classes, n_rows,
               rows_per_tile, mask_tail):
    """Unweighted cross-entropy with ignore_index, pixels on sublanes+lanes.

    logits_ref: (1, C, R, 128) native float dtype
    labels_ref: (1, R, 128)    native int dtype
    out_ref:    (1, 1, 2, 128) f32 packed partials: row 0 = NLL sum, row 1 = valid count
    """
    labels = labels_ref[0]                                     # (R, 128)

    # pass 1: per-pixel max over classes -- (C-1) vreg-wise maxima on the VALU
    m = logits_ref[0, 0]
    for ci in range(1, num_classes):
        m = jnp.maximum(m, logits_ref[0, ci])

    # pass 2: sum-of-exp (f32 accumulate) + label-logit gather via compare-select
    s = jnp.zeros(m.shape, jnp.float32)
    picked = jnp.zeros(m.shape, jnp.float32)
    for ci in range(num_classes):
        x = logits_ref[0, ci]
        # exp stays in the input dtype (bf16 EUP on v6e/v7x); accumulation is f32
        s = s + jnp.exp(x - m).astype(jnp.float32)
        picked = picked + jnp.where(labels == ci, x.astype(jnp.float32), 0.0)

    lse = m.astype(jnp.float32) + jnp.log(s)
    nll = lse - picked                                         # (R, 128) f32

    valid = labels != IGNORE_LABEL
    if mask_tail:  # static: only emitted when the last pixel tile is ragged
        rows = pl.program_id(1) * rows_per_tile + lax.broadcasted_iota(
            jnp.int32, labels.shape, 0)
        valid = valid & (rows < n_rows)

    # Keep the where-before-sum structure: OOB/garbage pixels may carry NaN in nll,
    # select (not multiply-mask) prevents propagation.
    nll_sum = jnp.sum(jnp.where(valid, nll, 0.0))
    cnt_sum = jnp.sum(valid.astype(jnp.float32))

    row = lax.broadcasted_iota(jnp.int32, (2, 128), 0)
    out_ref[0, 0] = jnp.where(row == 0, nll_sum, cnt_sum)


def weight_loss(predict, label, *, rows_per_tile=256):
    """CrossEntropyLoss(ignore_index=IGNORE_LABEL) over NCHW logits.

    predict: (N, C, H, W) float (f32 or bf16; bf16 math stays bf16 where possible)
    label:   (N, H, W)    int (native dtype, no wrapper cast)
    rows_per_tile: pixel rows (of 128) per grid step; 256 -> 32768 px/step.
                   Raise to 512 on v7x if DMA is exposed.
    returns: scalar float32 mean loss over non-ignored pixels
             (NaN if every pixel is ignored, matching PyTorch behavior)
    """
    n, c, h, w = predict.shape
    hw = h * w

    # Pixel axis must be a multiple of the 128-lane width for the free (..., R, 128) view.
    # Common segmentation shapes satisfy this; otherwise pad with IGNORE pixels (one copy).
    rem = hw % 128
    if rem:
        pad = 128 - rem
        predict = jnp.concatenate(
            [predict.reshape(n, c, hw), jnp.zeros((n, c, pad), predict.dtype)], axis=-1)
        label = jnp.concatenate(
            [label.reshape(n, hw),
             jnp.full((n, pad), IGNORE_LABEL, label.dtype)], axis=-1)
        hw += pad

    n_rows = hw // 128
    logits = predict.reshape(n, c, n_rows, 128)   # free view (no transpose)
    labels = label.reshape(n, n_rows, 128)        # free view, native int dtype

    r = min(rows_per_tile, n_rows)
    if r < n_rows:
        r = max(8, (r // 8) * 8)                  # (8,128) rule for partial blocks
    n_j = pl.cdiv(n_rows, r)
    mask_tail = (n_rows % r) != 0

    kernel = functools.partial(
        _ce_kernel, num_classes=c, n_rows=n_rows, rows_per_tile=r,
        mask_tail=mask_tail)

    block_bytes = (c * r * 128 * predict.dtype.itemsize
                   + r * 128 * label.dtype.itemsize + 2 * 128 * 4)
    vmem_limit = int(min(64 << 20, max(4 * block_bytes + (4 << 20), 32 << 20)))

    cost = pl.CostEstimate(
        flops=int(5 * n * c * hw),
        transcendentals=int(n * hw * (c + 1)),
        bytes_accessed=int(n * hw * (c * predict.dtype.itemsize
                                     + label.dtype.itemsize)
                           + n * n_j * 2 * 128 * 4),
    )

    partials = pl.pallas_call(
        kernel,
        out_shape=jax.ShapeDtypeStruct((n, n_j, 2, 128), jnp.float32),
        grid_spec=pltpu.PrefetchScalarGridSpec(
            num_scalar_prefetch=0,
            grid=(n, n_j),
            in_specs=[
                pl.BlockSpec((1, c, r, 128), lambda ni, j: (ni, 0, j, 0)),
                pl.BlockSpec((1, r, 128), lambda ni, j: (ni, j, 0)),
            ],
            out_specs=pl.BlockSpec((1, 1, 2, 128), lambda ni, j: (ni, j, 0, 0)),
        ),
        compiler_params=pltpu.CompilerParams(
            dimension_semantics=("parallel", "parallel"),
            vmem_limit_bytes=vmem_limit),
        cost_estimate=cost,
    )(logits, labels)

    total_sum = jnp.sum(partials[:, :, 0, 0])
    total_cnt = jnp.sum(partials[:, :, 1, 0])
    return total_sum / total_cnt


def _reference_loss(predict, label):
    # pure-JAX reference: softmax cross entropy with ignore_index, mean reduction
    n, c, h, w = predict.shape
    logits = jnp.transpose(predict, (0, 2, 3, 1)).reshape(-1, c).astype(jnp.float32)
    labels = label.reshape(-1).astype(jnp.int32)
    lse = jax.scipy.special.logsumexp(logits, axis=-1)
    safe = jnp.where(labels == IGNORE_LABEL, 0, labels)
    logit_y = jnp.take_along_axis(logits, safe[:, None], axis=-1)[:, 0]
    per = lse - logit_y
    valid = labels != IGNORE_LABEL
    return jnp.sum(jnp.where(valid, per, 0.0)) / jnp.sum(valid.astype(jnp.float32))


def _make_inputs(key, n, c, h, w):
    k1, k2, k3 = jax.random.split(key, 3)
    predict = jax.random.normal(k1, (n, c, h, w), dtype=jnp.float32)
    label = jax.random.randint(k2, (n, h, w), 0, c, dtype=jnp.int32)
    ignore_mask = jax.random.uniform(k3, (n, h, w)) < 0.1
    label = jnp.where(ignore_mask, IGNORE_LABEL, label)
    return predict, label


if __name__ == "__main__":
    key = jax.random.PRNGKey(0)
    k_a, k_b = jax.random.split(key)

    # Test 1: small canonical shape (hw multiple of 128, single pixel tile)
    predict, label = _make_inputs(k_a, 2, NUM_CLASSES, 16, 16)
    loss = weight_loss(predict, label)
    jax.block_until_ready(loss)
    ref = _reference_loss(predict, label)
    assert jnp.allclose(loss, ref, rtol=1e-5, atol=1e-5), (loss, ref)

    # Test 2: hw NOT a multiple of 128 (exercises the pad path) + forced multi-tile
    # with a ragged tail (exercises the in-kernel row mask and cross-tile reduction).
    predict2, label2 = _make_inputs(k_b, 2, NUM_CLASSES, 40, 52)  # hw = 2080
    loss2 = weight_loss(predict2, label2, rows_per_tile=8)
    jax.block_until_ready(loss2)
    ref2 = _reference_loss(predict2, label2)
    assert jnp.allclose(loss2, ref2, rtol=1e-5, atol=1e-5), (loss2, ref2)

    # TODO(synk): use_weight=True branch (per-class weights + weighted mean normalization)
    # not implemented; the default constructor path (unweighted CE) is what forward() uses.
    print("KERNEL_OK")
</pallas_src>

<mosaic_0001>
module attributes {stable_mosaic.version = 11 : i64} {
  func.func @_ce_kernel(%arg0: i32, %arg1: i32, %arg2: memref<1x13x2x128xf32, #tpu.memory_space<vmem>>, %arg3: memref<1x2x128xi32, #tpu.memory_space<vmem>>, %arg4: memref<1x1x2x128xf32, #tpu.memory_space<vmem>>) attributes {dimension_semantics = [#tpu.dimension_semantics<parallel>, #tpu.dimension_semantics<parallel>], iteration_bounds = array<i64: 2, 1>, scalar_prefetch = 0 : i64, scratch_operands = 0 : i64, tpu.core_type = #tpu.core_type<tc>, window_params = [{transform_indices = @transform_0, window_bounds = array<i64: 1, 13, 2, 128>}, {transform_indices = @transform_1, window_bounds = array<i64: 1, 2, 128>}, {transform_indices = @transform_2, window_bounds = array<i64: 1, 1, 2, 128>}]} {
    %c0 = arith.constant 0 : index
    %c0_0 = arith.constant 0 : index
    %c0_1 = arith.constant 0 : index
    %0 = vector.load %arg3[%c0, %c0_0, %c0_1] : memref<1x2x128xi32, #tpu.memory_space<vmem>>, vector<1x2x128xi32>
    %1 = vector.shape_cast %0 : vector<1x2x128xi32> to vector<2x128xi32>
    %c0_2 = arith.constant 0 : index
    %c0_3 = arith.constant 0 : index
    %c0_4 = arith.constant 0 : index
    %c0_5 = arith.constant 0 : index
    %2 = vector.load %arg2[%c0_2, %c0_3, %c0_4, %c0_5] : memref<1x13x2x128xf32, #tpu.memory_space<vmem>>, vector<1x1x2x128xf32>
    %3 = vector.shape_cast %2 : vector<1x1x2x128xf32> to vector<2x128xf32>
    %c0_6 = arith.constant 0 : index
    %c1 = arith.constant 1 : index
    %c0_7 = arith.constant 0 : index
    %c0_8 = arith.constant 0 : index
    %4 = vector.load %arg2[%c0_6, %c1, %c0_7, %c0_8] : memref<1x13x2x128xf32, #tpu.memory_space<vmem>>, vector<1x1x2x128xf32>
    %5 = vector.shape_cast %4 : vector<1x1x2x128xf32> to vector<2x128xf32>
    %6 = arith.maximumf %3, %5 : vector<2x128xf32>
    %c0_9 = arith.constant 0 : index
    %c2 = arith.constant 2 : index
    %c0_10 = arith.constant 0 : index
    %c0_11 = arith.constant 0 : index
    %7 = vector.load %arg2[%c0_9, %c2, %c0_10, %c0_11] : memref<1x13x2x128xf32, #tpu.memory_space<vmem>>, vector<1x1x2x128xf32>
    %8 = vector.shape_cast %7 : vector<1x1x2x128xf32> to vector<2x128xf32>
    %9 = arith.maximumf %6, %8 : vector<2x128xf32>
    %c0_12 = arith.constant 0 : index
    %c3 = arith.constant 3 : index
    %c0_13 = arith.constant 0 : index
    %c0_14 = arith.constant 0 : index
    %10 = vector.load %arg2[%c0_12, %c3, %c0_13, %c0_14] : memref<1x13x2x128xf32, #tpu.memory_space<vmem>>, vector<1x1x2x128xf32>
    %11 = vector.shape_cast %10 : vector<1x1x2x128xf32> to vector<2x128xf32>
    %12 = arith.maximumf %9, %11 : vector<2x128xf32>
    %c0_15 = arith.constant 0 : index
    %c4 = arith.constant 4 : index
    %c0_16 = arith.constant 0 : index
    %c0_17 = arith.constant 0 : index
    %13 = vector.load %arg2[%c0_15, %c4, %c0_16, %c0_17] : memref<1x13x2x128xf32, #tpu.memory_space<vmem>>, vector<1x1x2x128xf32>
    %14 = vector.shape_cast %13 : vector<1x1x2x128xf32> to vector<2x128xf32>
    %15 = arith.maximumf %12, %14 : vector<2x128xf32>
    %c0_18 = arith.constant 0 : index
    %c5 = arith.constant 5 : index
    %c0_19 = arith.constant 0 : index
    %c0_20 = arith.constant 0 : index
    %16 = vector.load %arg2[%c0_18, %c5, %c0_19, %c0_20] : memref<1x13x2x128xf32, #tpu.memory_space<vmem>>, vector<1x1x2x128xf32>
    %17 = vector.shape_cast %16 : vector<1x1x2x128xf32> to vector<2x128xf32>
    %18 = arith.maximumf %15, %17 : vector<2x128xf32>
    %c0_21 = arith.constant 0 : index
    %c6 = arith.constant 6 : index
    %c0_22 = arith.constant 0 : index
    %c0_23 = arith.constant 0 : index
    %19 = vector.load %arg2[%c0_21, %c6, %c0_22, %c0_23] : memref<1x13x2x128xf32, #tpu.memory_space<vmem>>, vector<1x1x2x128xf32>
    %20 = vector.shape_cast %19 : vector<1x1x2x128xf32> to vector<2x128xf32>
    %21 = arith.maximumf %18, %20 : vector<2x128xf32>
    %c0_24 = arith.constant 0 : index
    %c7 = arith.constant 7 : index
    %c0_25 = arith.constant 0 : index
    %c0_26 = arith.constant 0 : index
    %22 = vector.load %arg2[%c0_24, %c7, %c0_25, %c0_26] : memref<1x13x2x128xf32, #tpu.memory_space<vmem>>, vector<1x1x2x128xf32>
    %23 = vector.shape_cast %22 : vector<1x1x2x128xf32> to vector<2x128xf32>
    %24 = arith.maximumf %21, %23 : vector<2x128xf32>
    %c0_27 = arith.constant 0 : index
    %c8 = arith.constant 8 : index
    %c0_28 = arith.constant 0 : index
    %c0_29 = arith.constant 0 : index
    %25 = vector.load %arg2[%c0_27, %c8, %c0_28, %c0_29] : memref<1x13x2x128xf32, #tpu.memory_space<vmem>>, vector<1x1x2x128xf32>
    %26 = vector.shape_cast %25 : vector<1x1x2x128xf32> to vector<2x128xf32>
    %27 = arith.maximumf %24, %26 : vector<2x128xf32>
    %c0_30 = arith.constant 0 : index
    %c9 = arith.constant 9 : index
    %c0_31 = arith.constant 0 : index
    %c0_32 = arith.constant 0 : index
    %28 = vector.load %arg2[%c0_30, %c9, %c0_31, %c0_32] : memref<1x13x2x128xf32, #tpu.memory_space<vmem>>, vector<1x1x2x128xf32>
    %29 = vector.shape_cast %28 : vector<1x1x2x128xf32> to vector<2x128xf32>
    %30 = arith.maximumf %27, %29 : vector<2x128xf32>
    %c0_33 = arith.constant 0 : index
    %c10 = arith.constant 10 : index
    %c0_34 = arith.constant 0 : index
    %c0_35 = arith.constant 0 : index
    %31 = vector.load %arg2[%c0_33, %c10, %c0_34, %c0_35] : memref<1x13x2x128xf32, #tpu.memory_space<vmem>>, vector<1x1x2x128xf32>
    %32 = vector.shape_cast %31 : vector<1x1x2x128xf32> to vector<2x128xf32>
    %33 = arith.maximumf %30, %32 : vector<2x128xf32>
    %c0_36 = arith.constant 0 : index
    %c11 = arith.constant 11 : index
    %c0_37 = arith.constant 0 : index
    %c0_38 = arith.constant 0 : index
    %34 = vector.load %arg2[%c0_36, %c11, %c0_37, %c0_38] : memref<1x13x2x128xf32, #tpu.memory_space<vmem>>, vector<1x1x2x128xf32>
    %35 = vector.shape_cast %34 : vector<1x1x2x128xf32> to vector<2x128xf32>
    %36 = arith.maximumf %33, %35 : vector<2x128xf32>
    %c0_39 = arith.constant 0 : index
    %c12 = arith.constant 12 : index
    %c0_40 = arith.constant 0 : index
    %c0_41 = arith.constant 0 : index
    %37 = vector.load %arg2[%c0_39, %c12, %c0_40, %c0_41] : memref<1x13x2x128xf32, #tpu.memory_space<vmem>>, vector<1x1x2x128xf32>
    %38 = vector.shape_cast %37 : vector<1x1x2x128xf32> to vector<2x128xf32>
    %39 = arith.maximumf %36, %38 : vector<2x128xf32>
    %cst = arith.constant 0.000000e+00 : f32
    %40 = vector.broadcast %cst : f32 to vector<2x128xf32>
    %cst_42 = arith.constant 0.000000e+00 : f32
    %41 = vector.broadcast %cst_42 : f32 to vector<2x128xf32>
    %c0_43 = arith.constant 0 : index
    %c0_44 = arith.constant 0 : index
    %c0_45 = arith.constant 0 : index
    %c0_46 = arith.constant 0 : index
    %42 = vector.load %arg2[%c0_43, %c0_44, %c0_45, %c0_46] : memref<1x13x2x128xf32, #tpu.memory_space<vmem>>, vector<1x1x2x128xf32>
    %43 = vector.shape_cast %42 : vector<1x1x2x128xf32> to vector<2x128xf32>
    %44 = arith.subf %43, %39 : vector<2x128xf32>
    %45 = math.exp %44 : vector<2x128xf32>
    %46 = arith.addf %40, %45 : vector<2x128xf32>
    %c0_i32 = arith.constant 0 : i32
    %47 = vector.broadcast %c0_i32 : i32 to vector<2x128xi32>
    %48 = arith.cmpi eq, %1, %47 : vector<2x128xi32>
    %cst_47 = arith.constant 0.000000e+00 : f32
    %49 = vector.broadcast %cst_47 : f32 to vector<2x128xf32>
    %50 = arith.select %48, %43, %49 : vector<2x128xi1>, vector<2x128xf32>
    %51 = arith.addf %41, %50 : vector<2x128xf32>
    %c0_48 = arith.constant 0 : index
    %c1_49 = arith.constant 1 : index
    %c0_50 = arith.constant 0 : index
    %c0_51 = arith.constant 0 : index
    %52 = vector.load %arg2[%c0_48, %c1_49, %c0_50, %c0_51] : memref<1x13x2x128xf32, #tpu.memory_space<vmem>>, vector<1x1x2x128xf32>
    %53 = vector.shape_cast %52 : vector<1x1x2x128xf32> to vector<2x128xf32>
    %54 = arith.subf %53, %39 : vector<2x128xf32>
    %55 = math.exp %54 : vector<2x128xf32>
    %56 = arith.addf %46, %55 : vector<2x128xf32>
    %c1_i32 = arith.constant 1 : i32
    %57 = vector.broadcast %c1_i32 : i32 to vector<2x128xi32>
    %58 = arith.cmpi eq, %1, %57 : vector<2x128xi32>
    %cst_52 = arith.constant 0.000000e+00 : f32
    %59 = vector.broadcast %cst_52 : f32 to vector<2x128xf32>
    %60 = arith.select %58, %53, %59 : vector<2x128xi1>, vector<2x128xf32>
    %61 = arith.addf %51, %60 : vector<2x128xf32>
    %c0_53 = arith.constant 0 : index
    %c2_54 = arith.constant 2 : index
    %c0_55 = arith.constant 0 : index
    %c0_56 = arith.constant 0 : index
    %62 = vector.load %arg2[%c0_53, %c2_54, %c0_55, %c0_56] : memref<1x13x2x128xf32, #tpu.memory_space<vmem>>, vector<1x1x2x128xf32>
    %63 = vector.shape_cast %62 : vector<1x1x2x128xf32> to vector<2x128xf32>
    %64 = arith.subf %63, %39 : vector<2x128xf32>
    %65 = math.exp %64 : vector<2x128xf32>
    %66 = arith.addf %56, %65 : vector<2x128xf32>
    %c2_i32 = arith.constant 2 : i32
    %67 = vector.broadcast %c2_i32 : i32 to vector<2x128xi32>
    %68 = arith.cmpi eq, %1, %67 : vector<2x128xi32>
    %cst_57 = arith.constant 0.000000e+00 : f32
    %69 = vector.broadcast %cst_57 : f32 to vector<2x128xf32>
    %70 = arith.select %68, %63, %69 : vector<2x128xi1>, vector<2x128xf32>
    %71 = arith.addf %61, %70 : vector<2x128xf32>
    %c0_58 = arith.constant 0 : index
    %c3_59 = arith.constant 3 : index
    %c0_60 = arith.constant 0 : index
    %c0_61 = arith.constant 0 : index
    %72 = vector.load %arg2[%c0_58, %c3_59, %c0_60, %c0_61] : memref<1x13x2x128xf32, #tpu.memory_space<vmem>>, vector<1x1x2x128xf32>
    %73 = vector.shape_cast %72 : vector<1x1x2x128xf32> to vector<2x128xf32>
    %74 = arith.subf %73, %39 : vector<2x128xf32>
    %75 = math.exp %74 : vector<2x128xf32>
    %76 = arith.addf %66, %75 : vector<2x128xf32>
    %c3_i32 = arith.constant 3 : i32
    %77 = vector.broadcast %c3_i32 : i32 to vector<2x128xi32>
    %78 = arith.cmpi eq, %1, %77 : vector<2x128xi32>
    %cst_62 = arith.constant 0.000000e+00 : f32
    %79 = vector.broadcast %cst_62 : f32 to vector<2x128xf32>
    %80 = arith.select %78, %73, %79 : vector<2x128xi1>, vector<2x128xf32>
    %81 = arith.addf %71, %80 : vector<2x128xf32>
    %c0_63 = arith.constant 0 : index
    %c4_64 = arith.constant 4 : index
    %c0_65 = arith.constant 0 : index
    %c0_66 = arith.constant 0 : index
    %82 = vector.load %arg2[%c0_63, %c4_64, %c0_65, %c0_66] : memref<1x13x2x128xf32, #tpu.memory_space<vmem>>, vector<1x1x2x128xf32>
    %83 = vector.shape_cast %82 : vector<1x1x2x128xf32> to vector<2x128xf32>
    %84 = arith.subf %83, %39 : vector<2x128xf32>
    %85 = math.exp %84 : vector<2x128xf32>
    %86 = arith.addf %76, %85 : vector<2x128xf32>
    %c4_i32 = arith.constant 4 : i32
    %87 = vector.broadcast %c4_i32 : i32 to vector<2x128xi32>
    %88 = arith.cmpi eq, %1, %87 : vector<2x128xi32>
    %cst_67 = arith.constant 0.000000e+00 : f32
    %89 = vector.broadcast %cst_67 : f32 to vector<2x128xf32>
    %90 = arith.select %88, %83, %89 : vector<2x128xi1>, vector<2x128xf32>
    %91 = arith.addf %81, %90 : vector<2x128xf32>
    %c0_68 = arith.constant 0 : index
    %c5_69 = arith.constant 5 : index
    %c0_70 = arith.constant 0 : index
    %c0_71 = arith.constant 0 : index
    %92 = vector.load %arg2[%c0_68, %c5_69, %c0_70, %c0_71] : memref<1x13x2x128xf32, #tpu.memory_space<vmem>>, vector<1x1x2x128xf32>
    %93 = vector.shape_cast %92 : vector<1x1x2x128xf32> to vector<2x128xf32>
    %94 = arith.subf %93, %39 : vector<2x128xf32>
    %95 = math.exp %94 : vector<2x128xf32>
    %96 = arith.addf %86, %95 : vector<2x128xf32>
    %c5_i32 = arith.constant 5 : i32
    %97 = vector.broadcast %c5_i32 : i32 to vector<2x128xi32>
    %98 = arith.cmpi eq, %1, %97 : vector<2x128xi32>
    %cst_72 = arith.constant 0.000000e+00 : f32
    %99 = vector.broadcast %cst_72 : f32 to vector<2x128xf32>
    %100 = arith.select %98, %93, %99 : vector<2x128xi1>, vector<2x128xf32>
    %101 = arith.addf %91, %100 : vector<2x128xf32>
    %c0_73 = arith.constant 0 : index
    %c6_74 = arith.constant 6 : index
    %c0_75 = arith.constant 0 : index
    %c0_76 = arith.constant 0 : index
    %102 = vector.load %arg2[%c0_73, %c6_74, %c0_75, %c0_76] : memref<1x13x2x128xf32, #tpu.memory_space<vmem>>, vector<1x1x2x128xf32>
    %103 = vector.shape_cast %102 : vector<1x1x2x128xf32> to vector<2x128xf32>
    %104 = arith.subf %103, %39 : vector<2x128xf32>
    %105 = math.exp %104 : vector<2x128xf32>
    %106 = arith.addf %96, %105 : vector<2x128xf32>
    %c6_i32 = arith.constant 6 : i32
    %107 = vector.broadcast %c6_i32 : i32 to vector<2x128xi32>
    %108 = arith.cmpi eq, %1, %107 : vector<2x128xi32>
    %cst_77 = arith.constant 0.000000e+00 : f32
    %109 = vector.broadcast %cst_77 : f32 to vector<2x128xf32>
    %110 = arith.select %108, %103, %109 : vector<2x128xi1>, vector<2x128xf32>
    %111 = arith.addf %101, %110 : vector<2x128xf32>
    %c0_78 = arith.constant 0 : index
    %c7_79 = arith.constant 7 : index
    %c0_80 = arith.constant 0 : index
    %c0_81 = arith.constant 0 : index
    %112 = vector.load %arg2[%c0_78, %c7_79, %c0_80, %c0_81] : memref<1x13x2x128xf32, #tpu.memory_space<vmem>>, vector<1x1x2x128xf32>
    %113 = vector.shape_cast %112 : vector<1x1x2x128xf32> to vector<2x128xf32>
    %114 = arith.subf %113, %39 : vector<2x128xf32>
    %115 = math.exp %114 : vector<2x128xf32>
    %116 = arith.addf %106, %115 : vector<2x128xf32>
    %c7_i32 = arith.constant 7 : i32
    %117 = vector.broadcast %c7_i32 : i32 to vector<2x128xi32>
    %118 = arith.cmpi eq, %1, %117 : vector<2x128xi32>
    %cst_82 = arith.constant 0.000000e+00 : f32
    %119 = vector.broadcast %cst_82 : f32 to vector<2x128xf32>
    %120 = arith.select %118, %113, %119 : vector<2x128xi1>, vector<2x128xf32>
    %121 = arith.addf %111, %120 : vector<2x128xf32>
    %c0_83 = arith.constant 0 : index
    %c8_84 = arith.constant 8 : index
    %c0_85 = arith.constant 0 : index
    %c0_86 = arith.constant 0 : index
    %122 = vector.load %arg2[%c0_83, %c8_84, %c0_85, %c0_86] : memref<1x13x2x128xf32, #tpu.memory_space<vmem>>, vector<1x1x2x128xf32>
    %123 = vector.shape_cast %122 : vector<1x1x2x128xf32> to vector<2x128xf32>
    %124 = arith.subf %123, %39 : vector<2x128xf32>
    %125 = math.exp %124 : vector<2x128xf32>
    %126 = arith.addf %116, %125 : vector<2x128xf32>
    %c8_i32 = arith.constant 8 : i32
    %127 = vector.broadcast %c8_i32 : i32 to vector<2x128xi32>
    %128 = arith.cmpi eq, %1, %127 : vector<2x128xi32>
    %cst_87 = arith.constant 0.000000e+00 : f32
    %129 = vector.broadcast %cst_87 : f32 to vector<2x128xf32>
    %130 = arith.select %128, %123, %129 : vector<2x128xi1>, vector<2x128xf32>
    %131 = arith.addf %121, %130 : vector<2x128xf32>
    %c0_88 = arith.constant 0 : index
    %c9_89 = arith.constant 9 : index
    %c0_90 = arith.constant 0 : index
    %c0_91 = arith.constant 0 : index
    %132 = vector.load %arg2[%c0_88, %c9_89, %c0_90, %c0_91] : memref<1x13x2x128xf32, #tpu.memory_space<vmem>>, vector<1x1x2x128xf32>
    %133 = vector.shape_cast %132 : vector<1x1x2x128xf32> to vector<2x128xf32>
    %134 = arith.subf %133, %39 : vector<2x128xf32>
    %135 = math.exp %134 : vector<2x128xf32>
    %136 = arith.addf %126, %135 : vector<2x128xf32>
    %c9_i32 = arith.constant 9 : i32
    %137 = vector.broadcast %c9_i32 : i32 to vector<2x128xi32>
    %138 = arith.cmpi eq, %1, %137 : vector<2x128xi32>
    %cst_92 = arith.constant 0.000000e+00 : f32
    %139 = vector.broadcast %cst_92 : f32 to vector<2x128xf32>
    %140 = arith.select %138, %133, %139 : vector<2x128xi1>, vector<2x128xf32>
    %141 = arith.addf %131, %140 : vector<2x128xf32>
    %c0_93 = arith.constant 0 : index
    %c10_94 = arith.constant 10 : index
    %c0_95 = arith.constant 0 : index
    %c0_96 = arith.constant 0 : index
    %142 = vector.load %arg2[%c0_93, %c10_94, %c0_95, %c0_96] : memref<1x13x2x128xf32, #tpu.memory_space<vmem>>, vector<1x1x2x128xf32>
    %143 = vector.shape_cast %142 : vector<1x1x2x128xf32> to vector<2x128xf32>
    %144 = arith.subf %143, %39 : vector<2x128xf32>
    %145 = math.exp %144 : vector<2x128xf32>
    %146 = arith.addf %136, %145 : vector<2x128xf32>
    %c10_i32 = arith.constant 10 : i32
    %147 = vector.broadcast %c10_i32 : i32 to vector<2x128xi32>
    %148 = arith.cmpi eq, %1, %147 : vector<2x128xi32>
    %cst_97 = arith.constant 0.000000e+00 : f32
    %149 = vector.broadcast %cst_97 : f32 to vector<2x128xf32>
    %150 = arith.select %148, %143, %149 : vector<2x128xi1>, vector<2x128xf32>
    %151 = arith.addf %141, %150 : vector<2x128xf32>
    %c0_98 = arith.constant 0 : index
    %c11_99 = arith.constant 11 : index
    %c0_100 = arith.constant 0 : index
    %c0_101 = arith.constant 0 : index
    %152 = vector.load %arg2[%c0_98, %c11_99, %c0_100, %c0_101] : memref<1x13x2x128xf32, #tpu.memory_space<vmem>>, vector<1x1x2x128xf32>
    %153 = vector.shape_cast %152 : vector<1x1x2x128xf32> to vector<2x128xf32>
    %154 = arith.subf %153, %39 : vector<2x128xf32>
    %155 = math.exp %154 : vector<2x128xf32>
    %156 = arith.addf %146, %155 : vector<2x128xf32>
    %c11_i32 = arith.constant 11 : i32
    %157 = vector.broadcast %c11_i32 : i32 to vector<2x128xi32>
    %158 = arith.cmpi eq, %1, %157 : vector<2x128xi32>
    %cst_102 = arith.constant 0.000000e+00 : f32
    %159 = vector.broadcast %cst_102 : f32 to vector<2x128xf32>
    %160 = arith.select %158, %153, %159 : vector<2x128xi1>, vector<2x128xf32>
    %161 = arith.addf %151, %160 : vector<2x128xf32>
    %c0_103 = arith.constant 0 : index
    %c12_104 = arith.constant 12 : index
    %c0_105 = arith.constant 0 : index
    %c0_106 = arith.constant 0 : index
    %162 = vector.load %arg2[%c0_103, %c12_104, %c0_105, %c0_106] : memref<1x13x2x128xf32, #tpu.memory_space<vmem>>, vector<1x1x2x128xf32>
    %163 = vector.shape_cast %162 : vector<1x1x2x128xf32> to vector<2x128xf32>
    %164 = arith.subf %163, %39 : vector<2x128xf32>
    %165 = math.exp %164 : vector<2x128xf32>
    %166 = arith.addf %156, %165 : vector<2x128xf32>
    %c12_i32 = arith.constant 12 : i32
    %167 = vector.broadcast %c12_i32 : i32 to vector<2x128xi32>
    %168 = arith.cmpi eq, %1, %167 : vector<2x128xi32>
    %cst_107 = arith.constant 0.000000e+00 : f32
    %169 = vector.broadcast %cst_107 : f32 to vector<2x128xf32>
    %170 = arith.select %168, %163, %169 : vector<2x128xi1>, vector<2x128xf32>
    %171 = arith.addf %161, %170 : vector<2x128xf32>
    %172 = math.log %166 : vector<2x128xf32>
    %173 = arith.addf %39, %172 : vector<2x128xf32>
    %174 = arith.subf %173, %171 : vector<2x128xf32>
    %c255_i32 = arith.constant 255 : i32
    %175 = vector.broadcast %c255_i32 : i32 to vector<2x128xi32>
    %176 = arith.cmpi ne, %1, %175 : vector<2x128xi32>
    %cst_108 = arith.constant 0.000000e+00 : f32
    %177 = vector.broadcast %cst_108 : f32 to vector<2x128xf32>
    %178 = arith.select %176, %174, %177 : vector<2x128xi1>, vector<2x128xf32>
    %179 = vector.shape_cast %178 : vector<2x128xf32> to vector<1x2x128xf32>
    %cst_109 = arith.constant dense<0.000000e+00> : vector<1xf32>
    %180 = vector.multi_reduction <add>, %179, %cst_109 [1, 2] : vector<1x2x128xf32> to vector<1xf32>
    %181 = vector.shape_cast %180 : vector<1xf32> to vector<1x1x1xf32>
    %182 = vector.extract %181[0, 0, 0] : f32 from vector<1x1x1xf32>
    %183 = arith.extui %176 : vector<2x128xi1> to vector<2x128xi32>
    %184 = arith.sitofp %183 : vector<2x128xi32> to vector<2x128xf32>
    %185 = vector.shape_cast %184 : vector<2x128xf32> to vector<1x2x128xf32>
    %cst_110 = arith.constant dense<0.000000e+00> : vector<1xf32>
    %186 = vector.multi_reduction <add>, %185, %cst_110 [1, 2] : vector<1x2x128xf32> to vector<1xf32>
    %187 = vector.shape_cast %186 : vector<1xf32> to vector<1x1x1xf32>
    %188 = vector.extract %187[0, 0, 0] : f32 from vector<1x1x1xf32>
    %189 = tpu.iota {dimensions = array<i32: 0>} : vector<2x128xi32>
    %c0_i32_111 = arith.constant 0 : i32
    %190 = vector.broadcast %c0_i32_111 : i32 to vector<2x128xi32>
    %191 = arith.cmpi eq, %189, %190 : vector<2x128xi32>
    %192 = vector.broadcast %182 : f32 to vector<2x128xf32>
    %193 = vector.broadcast %188 : f32 to vector<2x128xf32>
    %194 = arith.select %191, %192, %193 : vector<2x128xi1>, vector<2x128xf32>
    %c0_112 = arith.constant 0 : index
    %c0_113 = arith.constant 0 : index
    %c0_114 = arith.constant 0 : index
    %c0_115 = arith.constant 0 : index
    %195 = vector.load %arg4[%c0_112, %c0_113, %c0_114, %c0_115] : memref<1x1x2x128xf32, #tpu.memory_space<vmem>>, vector<1x1x2x128xf32>
    %196 = vector.shape_cast %195 : vector<1x1x2x128xf32> to vector<2x128xf32>
    %197 = vector.shape_cast %194 : vector<2x128xf32> to vector<1x1x2x128xf32>
    tpu.vector_store %arg4[%c0_112, %c0_113, %c0_114, %c0_115], %197 {strides = array<i32>} : memref<1x1x2x128xf32, #tpu.memory_space<vmem>>, vector<1x1x2x128xf32>,
    return
  }
  func.func @transform_0(%arg0: i32, %arg1: i32) -> (i32, i32, i32, i32) {
    %c0_i32 = arith.constant 0 : i32
    %c0_i32_0 = arith.constant 0 : i32
    %c0_i32_1 = arith.constant 0 : i32
    return %arg0, %c0_i32, %arg1, %c0_i32_0 : i32, i32, i32, i32
  }
  func.func @transform_1(%arg0: i32, %arg1: i32) -> (i32, i32, i32) {
    %c0_i32 = arith.constant 0 : i32
    %c0_i32_0 = arith.constant 0 : i32
    return %arg0, %arg1, %c0_i32 : i32, i32, i32
  }
  func.func @transform_2(%arg0: i32, %arg1: i32) -> (i32, i32, i32, i32) {
    %c0_i32 = arith.constant 0 : i32
    %c0_i32_0 = arith.constant 0 : i32
    %c0_i32_1 = arith.constant 0 : i32
    return %arg0, %arg1, %c0_i32, %c0_i32_0 : i32, i32, i32, i32
  }
}

</mosaic_0001>

<bundles_post_ra>
// kernel: tpu_custom_call.1
= control target key start
LH: loop header
LB: loop body
LE: loop exit
PB: predicated region body
PF: predicated region fallthrough
CT: control target
= control target key end

     0   :  { %7 = vsyncpa [#allocation3], 0  ;;  %s1056_s0 = inlined_call_operand.hbm [shape: f32[2,13,2,128], index: 0, kind: input, shape index: {}]   ;;  %s1057_s1 = inlined_call_operand.hbm [shape: s32[2,2,128], index: 1, kind: input, shape index: {}]   ;;  %s1058_s2 = inlined_call_operand.hbm [shape: f32[2,1,2,128], index: 2, kind: output, shape index: {}]  }
   0x1   :  { %9 = vsyncpa [#allocation3 + $0x1], 0 }
   0x2   :  { %10 = vsyncpa [#allocation6], 0 }
   0x3   :  { %12 = vsyncpa [#allocation6 + $0x1], 0 }
   0x4   :  { %13 = vsyncpa [#allocation4], 0 }
   0x5   :  { %15 = vsyncpa [#allocation4 + $0x1], 0  ;;  %s799_s9 = smov 0   ;;  %s801_s10 = smov 0  }
   0x6   :  { %s803_s11 = smov 0   ;;  %s805_s12 = smov 0  }
   0x7   :  { %s807_s13 = smov 0   ;;  %s809_s14 = smov 0  }
   0x8 LB: > { %s504_s15 = sadd.s32 4294967295, %s776_s14   ;;  %s505_s16 = sadd.s32 4294967294, %s776_s14   ;;  %s776_s14 = sphi %s809_s14, %s21_s14   ;;  %s772_s13 = sphi %s807_s13, %s1069_s13   ;;  %s768_s12 = sphi %s805_s12, %s1068_s12   ;;  %s764_s11 = sphi %s803_s11, %s1067_s11   ;;  %s760_s10 = sphi %s801_s10, %s1066_s10   ;;  %s756_s9 = sphi %s799_s9, %s1065_s9  }
   0x9   : > { %s33_s17 = sadd.s32 1, %s772_s13  ;;  %s42_s18 = sadd.s32 1, %s764_s11 }
   0xa   : > { %p35_p0 = scmp.ge.s32.totalorder %s33_s17, 2  ;;  %p49_p1 = scmp.ne.s32.totalorder %s764_s11, %s760_s10 }
   0xb   : > { %p50_p2 = scmp.eq.s32.totalorder %s776_s14, 0  ;;  %p55_p3 = scmp.ne.s32.totalorder %s760_s10, %s756_s9 }
   0xc   : > { %s1071_s17 = smov (%p35_p0, %s33_s17), 0  ;;  %p56_p5 = scmp.eq.s32.totalorder %s504_s15, 0 }
   0xd   : > { %p840_p4 = por %p50_p2, %p49_p1  ;;  %s37_s20 = ssub.s32 %s772_s13, %s1071_s17 }
   0xe   : > { %p109_p6 = scmp.eq.s32.totalorder %s504_s15, 1  ;;  %p40_p7 = scmp.eq.s32.totalorder %s37_s20, 0 }
   0xf   : > { %p846_p8 = por %p56_p5, %p55_p3  ;;  %p115_p10 = scmp.eq.s32.totalorder %s505_s16, 1 }
  0x10   : > { %p850_p9 = por %p109_p6, %p49_p1  ;;  %p507_p12 = scmp.ge.s32.totalorder %s776_s14, 2 }
  0x11   : > { %s855_s23 = scalar_select %p40_p7, %s764_s11, %s42_s18  }
  0x12   : > { %p857_p11 = por %p115_p10, %p55_p3  ;;  %p555_p13 = scmp.lt.s32.totalorder %s776_s14, 2 }
  0x13   : > { %s864_s25 = sand.u32 1, %s764_s11   ;;  %s532_s27 = smul.u32 416, %s772_s13 }
  0x14   : > { %s531_s26 = smul.u32 26, %s864_s25  ;;  %p870_p0 = pnand %p555_p13, %p840_p4 }
  0x15   : > { %s146_s3 = scalar_lea.hbm %s1056_s0, %s532_s27  ;;  %p511_p1 = scmp.ge.s32.totalorder %s776_s14, 1 }
  0x16   : > { %s139_s4 = scalar_lea.vmem [#allocation2], %s531_s26  ;;  %s136_s6 = scalar_lea.sflag [#allocation3], %s864_s25 }
  0x17   : > { %s147_s5 = sshll.u32 %s139_s4, 4  ;;  %p638_p2 = pneg %p870_p0  ;;  %s148_s5 = int_to_ptr.vmem [resolvable:$true] %s147_s5 }
  0x18   : > { %s649_s7 = scalar_lea.vmem %s148_s5, 416  ;;  %s778_s8 = smov [#allocation2]  }
  0x19   : > { %p650_p3 = scmp.ne.s32.totalorder %s148_s5, %s649_s7  ;;  %s654_s15 = sshll.u32 %s778_s8, 4  ;;  %s655_s15 = int_to_ptr.vmem [resolvable:$false] %s654_s15 }
  0x1a   : > { %s656_s16 = scalar_lea.vmem %s655_s15, 832  ;;  %p657_p6 = scmp.lt.s32.totalorder %s148_s5, %s655_s15 }
  0x1b   : > { %p652_p4 = pnand %p650_p3, %p638_p2  ;;  %p658_p7 = scmp.lt.s32.totalorder %s656_s16, %s649_s7 }
  0x1d   : > { %p653_p5 = pneg %p652_p4  ;;  %p659_p10 = por %p658_p7, %p657_p6 }
  0x1f   : > { %p660_p13 = pnand %p659_p10, %p653_p5 }
  0x21   : > { %663 = shalt.err (!%p660_p13)
}
  0x22   : > { %s779_s18 = smov 32   ;;  %s780_s19 = smov 2  }
  0x23   : > { %547 = dma.hbm_to_vmem [thread:$0]  (!%p870_p0), %s146_s3, 416, %s148_s5, %s136_s6, %s779_s18, %s779_s18, %s780_s19  }
  0x24   : > { %p174_p3 = scmp.lt.s32.totalorder %s776_s14, 3  ;;  %s509_s20 = sshll.u32 %s864_s25, 1 }
  0x25   : > { %s510_s26 = sshll.u32 %s772_s13, 5  ;;  %s161_s7 = scalar_lea.vmem [#allocation5], %s509_s20 }
  0x26   : > { %p891_p4 = pnand %p511_p1, %p174_p3  ;;  %s167_s4 = scalar_lea.hbm %s1057_s1, %s510_s26 }
  0x27   : > { %s169_s8 = sshll.u32 %s161_s7, 4  ;;  %s158_s15 = scalar_lea.sflag [#allocation6], %s864_s25  ;;  %s170_s8 = int_to_ptr.vmem [resolvable:$true] %s169_s8 }
  0x28   : > { %s677_s16 = scalar_lea.vmem %s170_s8, 32  ;;  %s781_s3 = smov [#allocation5]  }
  0x29   : > { %p678_p5 = scmp.ne.s32.totalorder %s170_s8, %s677_s16  ;;  %s682_s5 = sshll.u32 %s781_s3, 4  ;;  %s683_s5 = int_to_ptr.vmem [resolvable:$false] %s682_s5 }
  0x2a   : > { %s684_s6 = scalar_lea.vmem %s683_s5, 64  ;;  %p685_p1 = scmp.lt.s32.totalorder %s170_s8, %s683_s5 }
  0x2b   : > { %p680_p6 = pnand %p678_p5, %p638_p2  ;;  %p686_p10 = scmp.lt.s32.totalorder %s684_s6, %s677_s16 }
  0x2d   : > { %p681_p7 = pneg %p680_p6  ;;  %p687_p13 = por %p686_p10, %p685_p1 }
  0x2f   : > { %p688_p3 = pnand %p687_p13, %p681_p7 }
  0x31   : > { %691 = shalt.err (!%p688_p3)
}
  0x32   : > { %550 = dma.hbm_to_vmem [thread:$0]  (!%p870_p0), %s167_s4, 32, %s170_s8, %s158_s15  }
  0x33   : > { %178 = sbr.rel (%p891_p4) target bundleno = 369 (0x171), region = 28  ;;  %s907_s25 = sand.u32 (!%p891_p4), 1, %s760_s10  }
  0x34   : > { %s533_s18 = smul.u32 (!%p891_p4), 26, %s907_s25  ;;  %s181_s19 = scalar_lea.sflag (!%p891_p4), [#allocation3], %s907_s25 }
  0x36   : > { %s184_s20 = scalar_lea.vmem (!%p891_p4), [#allocation2], %s533_s18 }
  0x38   : > { %743 = dma.done.wait (%p846_p8), %s181_s19, 416  }
  0x39   : > { %745 = vsyncadd (%p846_p8), %s181_s19, 4294966880  ;;  %s512_s28 = sshll.u32 %s907_s25, 1  ;;  %s190_s26 = scalar_lea.sflag [#allocation6], %s907_s25 }
  0x3a   : > { %s919_s27 = scalar_lea.vmem [#allocation5], %s512_s28 }
  0x3b   : > { %747 = dma.done.wait (%p846_p8), %s190_s26, 32  }
  0x3c   : > { %749 = vsyncadd (%p846_p8), %s190_s26, 4294967264  ;;  %v220_v0 = vld [vmem:[%s184_s20] sm:$0x3]  ;;  %v514_v1 = vld [vmem:[%s184_s20 + $0x2] sm:$0x3]  ;;  %vm354_vm14 = vcmask 1041408  }
  0x3d   : > { %v223_v2 = vmax.f32 %v220_v0, %v514_v1  ;;  %v515_v3 = vld [vmem:[%s184_s20 + $0x4] sm:$0x3]  ;;  %v925_v4 = vld [vmem:[%s184_s20 + $0x6] sm:$0x3]  ;;  %v927_v6 = vld [vmem:[%s184_s20 + $0x8] sm:$0x3] }
  0x3e   : > { %v930_v8 = vld [vmem:[%s184_s20 + $0xa] sm:$0x3]  ;;  %v933_v10 = vld [vmem:[%s184_s20 + $0xc] sm:$0x3]  ;;  %v936_v12 = vld [vmem:[%s184_s20 + $0xe] sm:$0x3] }
  0x3f   : > { %v226_v5 = vmax.f32 %v223_v2, %v515_v3  ;;  %v939_v14 = vld [vmem:[%s184_s20 + $0x10] sm:$0x3]  ;;  %v942_v16 = vld [vmem:[%s184_s20 + $0x12] sm:$0x3]  ;;  %v945_v18 = vld [vmem:[%s184_s20 + $0x14] sm:$0x3] }
  0x40   : > { %v948_v20 = vld [vmem:[%s184_s20 + $0x16] sm:$0x3]  ;;  %v951_v22 = vld [vmem:[%s184_s20 + $0x18] sm:$0x3]  ;;  %v965_v33 = vld [vmem:[%s919_s27] sm:$0x3] }
  0x41   : > { %v229_v7 = vmax.f32 %v226_v5, %v925_v4  ;;  %vm261_vm0 = vcmp.eq.s32.totalorder %v965_v33, 0  ;;  %vm268_vm1 = vcmp.eq.s32.totalorder %v965_v33, 1  ;;  %vm275_vm2 = vcmp.eq.s32.totalorder %v965_v33, 2  ;;  %s528_s21 = sshll.u32 %s768_s12, 5  ;;  %s218_s30 = scalar_lea.vmem [#allocation7], %s512_s28 }
  0x42   : > { %v262_v42 = vsel %vm261_vm0, %v220_v0, 0.0  ;;  %v269_v43 = vsel %vm268_vm1, %v514_v1, 0.0  ;;  %v276_v49 = vsel %vm275_vm2, %v515_v3, 0.0  ;;  %vm282_vm3 = vcmp.eq.s32.totalorder %v965_v33, 3  ;;  %s399_s4 = sshll.u32 %s218_s30, 4  ;;  %s1014_s16 = scalar_lea.hbm %s1058_s2, %s528_s21  ;;  %s400_s4 = int_to_ptr.vmem [resolvable:$true] %s399_s4 }
  0x43   : > { %v232_v9 = vmax.f32 %v229_v7, %v927_v6  ;;  %v270_v46 = vadd.f32 %v269_v43, %v262_v42  ;;  %v283_v57 = vsel %vm282_vm3, %v925_v4, 0.0  ;;  %vm289_vm4 = vcmp.eq.s32.totalorder %v965_v33, 4  ;;  %s385_s3 = scalar_lea.sflag [#allocation4], %s907_s25  ;;  %s692_s5 = scalar_lea.vmem %s400_s4, 32 }
  0x44   : > { %v290_v2 = vsel %vm289_vm4, %v927_v6, 0.0  ;;  %vm296_vm5 = vcmp.eq.s32.totalorder %v965_v33, 5  ;;  %vm303_vm6 = vcmp.eq.s32.totalorder %v965_v33, 6  ;;  %vm310_vm7 = vcmp.eq.s32.totalorder %v965_v33, 7  ;;  %p693_p8 = scmp.ne.s32.totalorder %s400_s4, %s692_s5  ;;  %s783_s12 = smov [#allocation7]  }
  0x45   : > { %v235_v11 = vmax.f32 %v232_v9, %v930_v8  ;;  %v277_v53 = vadd.f32 %v276_v49, %v270_v46  ;;  %vm317_vm8 = vcmp.eq.s32.totalorder %v965_v33, 8  ;;  %vm324_vm9 = vcmp.eq.s32.totalorder %v965_v33, 9  ;;  %s696_s6 = sshll.u32 %s783_s12, 4  ;;  %s697_s6 = int_to_ptr.vmem [resolvable:$false] %s696_s6 }
  0x46   : > { %vm331_vm10 = vcmp.eq.s32.totalorder %v965_v33, 10  ;;  %vm338_vm11 = vcmp.eq.s32.totalorder %v965_v33, 11  ;;  %vm345_vm12 = vcmp.eq.s32.totalorder %v965_v33, 12  ;;  %vm352_vm13 = vcmp.ne.s32.totalorder %v965_v33, 255  ;;  %p694_p0 = pnand %p693_p8, %p850_p9  ;;  %s698_s18 = scalar_lea.vmem %s697_s6, 64 }
  0x47   : > { %v238_v13 = vmax.f32 %v235_v11, %v933_v10  ;;  %v284_v63 = vadd.f32 %v283_v57, %v277_v53  ;;  %v297_v11 = vsel %vm296_vm5, %v930_v8, 0.0  ;;  %v346_v42 = vsel %vm345_vm12, %v951_v22, 0.0  ;;  %p699_p4 = scmp.lt.s32.totalorder %s400_s4, %s697_s6  ;;  %p700_p5 = scmp.lt.s32.totalorder %s698_s18, %s692_s5 }
  0x48   : > { %p695_p2 = pneg %p694_p0 }
  0x49   : > { %v241_v15 = vmax.f32 %v238_v13, %v936_v12  ;;  %v291_v7 = vadd.f32 %v290_v2, %v284_v63  ;;  %p701_p6 = por %p700_p5, %p699_p4 }
  0x4b   : > { %v244_v17 = vmax.f32 %v241_v15, %v939_v14  ;;  %p702_p7 = pnand %p701_p6, %p695_p2 }
  0x4d   : > { %v247_v19 = vmax.f32 %v244_v17, %v942_v16  ;;  %v298_v17 = vadd.f32 %v297_v11, %v291_v7 }
  0x4f   : > { %v250_v21 = vmax.f32 %v247_v19, %v945_v18 }
  0x51   : > { %v253_v23 = vmax.f32 %v250_v21, %v948_v20 }
  0x53   : > { %v955_v24 = vmax.f32 %v253_v23, %v951_v22 }
  0x55   : > { %v257_v25 = vsub.f32 %v220_v0, %v955_v24  ;;  %v264_v26 = vsub.f32 %v514_v1, %v955_v24  ;;  %v271_v27 = vsub.f32 %v515_v3, %v955_v24  ;;  %v278_v28 = vsub.f32 %v925_v4, %v955_v24 }
  0x56   : > { %v285_v29 = vsub.f32 %v927_v6, %v955_v24  ;;  %v292_v35 = vsub.f32 %v930_v8, %v955_v24  ;;  %v299_v37 = vsub.f32 %v933_v10, %v955_v24  ;;  %v306_v39 = vsub.f32 %v936_v12, %v955_v24 }
  0x57   : > { %v258_v30 = vmul.f32 1.442695, %v257_v25  ;;  %v265_v31 = vmul.f32 1.442695, %v264_v26  ;;  %v272_v32 = vmul.f32 1.442695, %v271_v27  ;;  %v313_v41 = vsub.f32 %v939_v14, %v955_v24 }
  0x58   : > { %v279_v34 = vmul.f32 1.442695, %v278_v28  ;;  %v286_v36 = vmul.f32 1.442695, %v285_v29  ;;  %v293_v38 = vmul.f32 1.442695, %v292_v35  ;;  %v320_v45 = vsub.f32 %v942_v16, %v955_v24 }
  0x59   : > { %608 = vpow2.f32 %v258_v30  ;;  %v300_v40 = vmul.f32 1.442695, %v299_v37  ;;  %v307_v44 = vmul.f32 1.442695, %v306_v39  ;;  %v314_v47 = vmul.f32 1.442695, %v313_v41 }
  0x5a   : > { %610 = vpow2.f32 %v265_v31  ;;  %v327_v48 = vsub.f32 %v945_v18, %v955_v24  ;;  %v321_v50 = vmul.f32 1.442695, %v320_v45  ;;  %v334_v51 = vsub.f32 %v948_v20, %v955_v24 }
  0x5b   : > { %612 = vpow2.f32 %v272_v32  ;;  %v341_v55 = vsub.f32 %v951_v22, %v955_v24  ;;  %v304_v6 = vsel %vm303_vm6, %v933_v10, 0.0  ;;  %v311_v29 = vsel %vm310_vm7, %v936_v12, 0.0 }
  0x5c   : > { %614 = vpow2.f32 %v279_v34  ;;  %v328_v54 = vmul.f32 1.442695, %v327_v48  ;;  %v335_v60 = vmul.f32 1.442695, %v334_v51  ;;  %v305_v26 = vadd.f32 %v304_v6, %v298_v17 }
  0x5d   : > { %616 = vpow2.f32 %v286_v36  ;;  %v342_v0 = vmul.f32 1.442695, %v341_v55  ;;  %v318_v35 = vsel %vm317_vm8, %v939_v14, 0.0  ;;  %v332_v39 = vsel %vm331_vm10, %v945_v18, 0.0 }
  0x5e   : > { %618 = vpow2.f32 %v293_v38  ;;  %v312_v31 = vadd.f32 %v311_v29, %v305_v26  ;;  %v325_v38 = vsel %vm324_vm9, %v942_v16, 0.0  ;;  %v339_v41 = vsel %vm338_vm11, %v948_v20, 0.0 }
  0x5f   : > { %620 = vpow2.f32 %v300_v40 }
  0x60   : > { %622 = vpow2.f32 %v307_v44  ;;  %v319_v36 = vadd.f32 %v318_v35, %v312_v31 }
  0x61   : > { %624 = vpow2.f32 %v314_v47  ;;  %v782_v47 = vmov 0.0  }
  0x62   : > { %626 = vpow2.f32 %v321_v50  ;;  %v326_v12 = vadd.f32 %v325_v38, %v319_v36  ;;  %v526_v48 = vsel %vm352_vm13, 1.0, %v782_v47 }
  0x63   : > { %628 = vpow2.f32 %v328_v54  ;;  %v367_v20 = vsel %vm354_vm14, %v526_v48, 0.0 }
  0x64   : > { %630 = vpow2.f32 %v335_v60  ;;  %v333_v40 = vadd.f32 %v332_v39, %v326_v12 }
  0x65   : > { %632 = vpow2.f32 %v342_v0 }
  0x66   : > { %v609_v52 = vpop.eup %608  ;;  %v340_v14 = vadd.f32 %v339_v41, %v333_v40 }
  0x67   : > { %v611_v56 = vpop.eup %610 }
  0x68   : > { %v613_v58 = vpop.eup %612  ;;  %v267_v59 = vadd.f32 %v611_v56, %v609_v52  ;;  %v347_v44 = vadd.f32 %v346_v42, %v340_v14 }
  0x69   : > { %v615_v61 = vpop.eup %614 }
  0x6a   : > { %v274_v62 = vadd.f32 %v613_v58, %v267_v59  ;;  %v617_v1 = vpop.eup %616 }
  0x6b   : > { %v619_v5 = vpop.eup %618 }
  0x6c   : > { %v281_v3 = vadd.f32 %v615_v61, %v274_v62  ;;  %v621_v9 = vpop.eup %620  ;;  %v377_v61 = vlaneseq }
  0x6d   : > { %v623_v15 = vpop.eup %622 }
  0x6e   : > { %v288_v4 = vadd.f32 %v617_v1, %v281_v3  ;;  %v625_v21 = vpop.eup %624  ;;  %v378_v62 = vshrl.u32 %v377_v61, 7 }
  0x6f   : > { %v627_v25 = vpop.eup %626 }
  0x70   : > { %v295_v13 = vadd.f32 %v619_v5, %v288_v4  ;;  %v629_v28 = vpop.eup %628  ;;  %vm379_vm15 = vcmp.eq.s32.totalorder %v378_v62, 0 }
  0x71   : > { %v631_v30 = vpop.eup %630 }
  0x72   : > { %v302_v19 = vadd.f32 %v621_v9, %v295_v13  ;;  %v633_v34 = vpop.eup %632 }
  0x74   : > { %v309_v23 = vadd.f32 %v623_v15, %v302_v19 }
  0x76   : > { %v316_v27 = vadd.f32 %v625_v21, %v309_v23 }
  0x78   : > { %v323_v8 = vadd.f32 %v627_v25, %v316_v27 }
  0x7a   : > { %v330_v32 = vadd.f32 %v629_v28, %v323_v8 }
  0x7c   : > { %v337_v10 = vadd.f32 %v631_v30, %v330_v32 }
  0x7e   : > { %v344_v37 = vadd.f32 %v633_v34, %v337_v10 }
  0x80   : > { %634 = vlog2.f32 %v344_v37 }
  0x8d   : > { %v635_v43 = vpop.eup %634 }
  0x8e   : > { %v349_v45 = vmul.f32 0.6931472, %v635_v43 }
  0x90   : > { %v350_v16 = vadd.f32 %v349_v45, %v955_v24 }
  0x92   : > { %v351_v46 = vsub.f32 %v350_v16, %v347_v44 }
  0x94   : > { %v353_v18 = vsel %vm352_vm13, %v351_v46, 0.0 }
  0x95   : > { %v355_v49 = vsel %vm354_vm14, %v353_v18, 0.0 }
  0x96   : > { %356 = vadd.xlane.f32.xlu0 %v355_v49 }
  0x9a   : > { %368 = vadd.xlane.f32.xlu0 %v367_v20 }
 0x11f   : > { %v357_v50 = vpop.xlane.xlu0 %356 }
 0x120   : > { %v358_v51 = vrot.slane %v357_v50, 4 }
 0x122   : > { %v359_v52 = vadd.f32 %v358_v51, %v357_v50 }
 0x123   : > { %v369_v22 = vpop.xlane.xlu0 %368 }
 0x124   : > { %v360_v53 = vrot.slane %v359_v52, 2  ;;  %v370_v54 = vrot.slane %v369_v22, 4 }
 0x126   : > { %v371_v24 = vadd.f32 %v370_v54, %v369_v22  ;;  %v361_v55 = vadd.f32 %v360_v53, %v359_v52 }
 0x128   : > { %v372_v33 = vrot.slane %v371_v24, 2  ;;  %v362_v56 = vrot.slane %v361_v55, 1 }
 0x12a   : > { %v373_v57 = vadd.f32 %v372_v33, %v371_v24  ;;  %v363_v58 = vadd.f32 %v362_v56, %v361_v55 }
 0x12c   : > { %534 = vpush %v363_v58  ;;  %v374_v59 = vrot.slane %v373_v57, 1 }
 0x12e   : > { %v375_v60 = vadd.f32 %v374_v59, %v373_v57 }
 0x130   : > { %536 = vpush %v375_v60 }
 0x15d   : > { %s535_s29 = spop %534 }
 0x15e   : > { %v380_v63 = vstv %s535_s29 }
 0x161   : > { %s537_s7 = spop %536 }
 0x162   : > { %v381_v0 = vstv %s537_s7 }
 0x163   : > { %v382_v1 = vsel %vm379_vm15, %v380_v63, %v381_v0 }
 0x164   : > { %383 = vst [vmem:[%s218_s30] sm:$0x3] %v382_v1 }
 0x165   : > { %705 = shalt.err (!%p702_p7)
}
 0x166   : > { %s706_s19 = scalar_lea.hbm %s1014_s16, 32  ;;  %s710_s28 = scalar_lea.hbm %s1058_s2, 64 }
 0x167   : > { %p707_p1 = scmp.ne.s32.totalorder %s1014_s16, %s706_s19  ;;  %p711_p3 = scmp.lt.s32.totalorder %s1014_s16, %s1058_s2 }
 0x168   : > { %p712_p8 = scmp.lt.s32.totalorder %s710_s28, %s706_s19 }
 0x169   : > { %p708_p10 = pnand %p707_p1, %p850_p9 }
 0x16a   : > { %p713_p0 = por %p712_p8, %p711_p3 }
 0x16b   : > { %p709_p13 = pneg %p708_p10 }
 0x16d   : > { %p714_p2 = pnand %p713_p0, %p709_p13 }
 0x16f   : > { %717 = shalt.err (!%p714_p2)
}
 0x170   : > { %542 = dma.vmem_to_hbm [thread:$0]  (%p850_p9), %s400_s4, 32, %s1014_s16, %s385_s3  }
 0x171 PF: > { %s411_s21 = sand.u32 1, %s756_s9   ;;  %p552_p4 = pnand %p507_p12, %p857_p11 }
 0x172   : > { %s412_s29 = scalar_lea.sflag [#allocation4], %s411_s21 }
 0x173   : > { %p553_p5 = pneg %p552_p4 }
 0x175   : > { %751 = dma.done.wait (%p553_p5), %s412_s29, 32  }
 0x176   : > { %753 = vsyncadd (%p553_p5), %s412_s29, 4294967264  ;;  %s21_s14 = sadd.s32 1, %s776_s14   ;;  %s1065_s9 = smov %s760_s10 }
 0x177   : > { %p18_p6 = scmp.ge.s32.totalorder %s21_s14, 4   ;;  %s1066_s10 = smov %s764_s11 }
 0x178   : > { %s1067_s11 = smov %s855_s23  ;;  %s1068_s12 = smov %s772_s13 }
 0x179   : > { %s1069_s13 = smov %s1071_s17  ;;  %20 = sbr.rel (!%p18_p6) target bundleno = 8 (0x8), region = 98 }
 0x17e   :  { %417 = vsyncpa [#allocation3], 1 }
 0x17f   :  { %419 = vsyncpa [#allocation3 + $0x1], 1 }
 0x180   :  { %420 = vsyncpa [#allocation6], 1 }
 0x181   :  { %422 = vsyncpa [#allocation6 + $0x1], 1 }
 0x182   :  { %423 = vsyncpa [#allocation4], 1 }
 0x183   :  { %425 = vsyncpa [#allocation4 + $0x1], 1 }

</bundles_post_ra>
